<compile_context>
chip_gen: v6e
topology: v6e:2x2x1
jax: 0.10.0
libtpu: 0.0.40
codegen_flags: <defaults>
</compile_context>

<pallas_src>
import jax
import jax.numpy as jnp
from jax.experimental import pallas as pl
from jax.experimental.pallas import tpu as pltpu

# Small synthetic shapes consistent with the module's forward pass.
B, H, W = 2, 16, 16          # batch, spatial
CIN = 3                      # camera image channels
C1 = 8                       # backbone hidden channels
NC = 4                       # segmentation classes
CMD = 4                      # one-hot driving command (follow/left/right/straight)
HID = 32                     # FCD hidden width
OUT = 3                      # steering / throttle / brake
KH = KW = 3                  # conv kernel size (3x3, 'same' padding)
OUT_PAD = 128                # lane-dense padded output width
HW = H * W
K_CONV = KH * KW * CIN + 1   # 27 conv taps + 1 ones-row (folds the conv bias)

_FLOPS = 2 * (C1 * K_CONV * B * HW          # conv
              + B * (C1 * HW) * HID         # FC1 (fused score-conv + flatten)
              + B * CMD * HID               # command split-matmul
              + B * HID * OUT_PAD)          # FC2 (padded)
_BYTES = (K_CONV * B * HW * 2               # patches^T bf16
          + B * CMD * 4                     # command f32
          + C1 * K_CONV * 2                 # w1^T bf16
          + C1 * HW * HID * 2               # fused FC1 weight bf16
          + HID * OUT_PAD * 2               # padded FC2 weight bf16
          + 8 * 128 * 4                     # const slab f32
          + B * OUT_PAD * 4)                # padded output f32


def seg_drive_kernel(patch_ref, cmd_ref, w1_ref, wf1x_ref, wf2_ref, const_ref,
                     out_ref):
    # ---------------- SegmentationNetwork ----------------
    # 3x3 'same' conv as one transposed im2col matmul: bf16 MXU inputs,
    # lane-dense [C1, B*H*W] f32 result.  The conv bias rides on the ones-row
    # of the patch matrix (column C1 of w1_ref), so only ReLU remains here.
    h1t = jnp.dot(w1_ref[...], patch_ref[...],
                  preferred_element_type=jnp.float32)              # [C1, B*H*W]
    h1t = jnp.maximum(h1t, 0.0).astype(jnp.bfloat16)               # cast BEFORE relayout

    # ---------------- 1x1 score conv + flatten + FCD ----------------
    # Columns of h1t are (b, h, w); per-batch flatten to rows in (c1, h, w)
    # order, which matches the (d,h,w) row order of the fused FC1 weight
    # (score conv w2/b2 and the PyTorch NCHW .view are folded in at prep time).
    x_rows = [h1t[:, b * HW:(b + 1) * HW].reshape(1, C1 * HW) for b in range(B)]
    x_flat = jnp.concatenate(x_rows, axis=0)                       # [B, C1*H*W] bf16

    h = jnp.dot(x_flat, wf1x_ref[...],
                preferred_element_type=jnp.float32)                # [B, HID]
    wf1c = const_ref[2:2 + CMD, 0:HID].astype(jnp.bfloat16)        # [CMD, HID]
    h = h + jnp.dot(cmd_ref[...].astype(jnp.bfloat16), wf1c,
                    preferred_element_type=jnp.float32)
    h = jnp.maximum(h + const_ref[1:2, 0:HID], 0.0)                # + fused bf1, ReLU

    # Final FC against a 128-lane zero-padded bf16 weight -> lane-dense store.
    out = jnp.dot(h.astype(jnp.bfloat16), wf2_ref[...],
                  preferred_element_type=jnp.float32) + const_ref[0:1, :]
    out_ref[...] = out.astype(out_ref.dtype)


def make_params(key):
    """Canonical (PyTorch-convention) weights."""
    ks = jax.random.split(key, 8)
    scale = 0.1
    return {
        "w1":   scale * jax.random.normal(ks[0], (KH, KW, CIN, C1), jnp.float32),
        "b1":   scale * jax.random.normal(ks[1], (1, C1), jnp.float32),
        "w2":   scale * jax.random.normal(ks[2], (C1, NC), jnp.float32),
        "b2":   scale * jax.random.normal(ks[3], (1, NC), jnp.float32),
        # fc1 weight for the flattened segmentation features, rows in canonical
        # NCHW-flatten order (c, h, w) — exactly like the PyTorch .view.
        "wf1x": scale * jax.random.normal(ks[4], (NC * H * W, HID), jnp.float32),
        "wf1c": scale * jax.random.normal(ks[5], (CMD, HID), jnp.float32),
        "bf1":  scale * jax.random.normal(ks[6], (1, HID), jnp.float32),
        "wf2":  scale * jax.random.normal(ks[7], (HID, OUT), jnp.float32),
        "bf2":  jnp.zeros((1, OUT), jnp.float32),
    }


def prepare_params(params):
    """One-time weight massaging, hoisted out of the per-call path."""
    # Conv weight transposed for a lane-dense MXU result; bias folded in as an
    # extra K column matched by the ones-row of the patch matrix.
    w1t = jnp.transpose(params["w1"], (3, 0, 1, 2)).reshape(C1, KH * KW * CIN)
    w1t_aug = jnp.concatenate([w1t, params["b1"].T], axis=1)       # [C1, 28]

    # Fold the 1x1 score conv and the NCHW flatten into FC1.  The kernel
    # flattens each batch in (c1, h, w) order, so fused rows are (d, h, w):
    #   wf1x_fused[(d,h,w), j] = sum_c w2[d,c] * wf1x[(c,h,w), j]
    wf1x_4d = params["wf1x"].reshape(NC, H, W, HID)                # (c, h, w, j)
    wf1x_fused = jnp.einsum("dc,chwj->dhwj", params["w2"], wf1x_4d)
    wf1x_fused = wf1x_fused.reshape(C1 * H * W, HID)
    bf1_fused = params["bf1"][0] + jnp.einsum("c,chwj->j",
                                              params["b2"][0], wf1x_4d)

    # 128-lane zero-pad the final layer so the output store is lane-dense.
    wf2_pad = jnp.zeros((HID, OUT_PAD), jnp.float32).at[:, :OUT].set(params["wf2"])

    # Pack the remaining small constants into one f32 [8,128] slab:
    #   row 0          : bf2 (lane-padded to 128)
    #   row 1          : fused bf1
    #   rows 2..2+CMD  : wf1c
    const = jnp.zeros((8, 128), jnp.float32)
    const = const.at[0, :OUT].set(params["bf2"][0])
    const = const.at[1, :HID].set(bf1_fused)
    const = const.at[2:2 + CMD, :HID].set(params["wf1c"])

    return {
        "w1t":   w1t_aug.astype(jnp.bfloat16),
        "wf1x":  wf1x_fused.astype(jnp.bfloat16),
        "wf2":   wf2_pad.astype(jnp.bfloat16),
        "const": const,
    }


def _im2col_t(img_nchw):
    """NCHW image -> bf16 [KH*KW*CIN + 1, B*H*W] transposed patch matrix.

    Rows are (kh, kw, cin) plus a trailing ones-row (conv-bias fold); columns
    are (b, h, w).  'same' 3x3 padding.
    """
    img = jnp.transpose(img_nchw, (0, 2, 3, 1))                    # [B,H,W,CIN]
    img_pad = jnp.pad(img, ((0, 0), (1, 1), (1, 1), (0, 0)))       # [B,H+2,W+2,CIN]
    taps = [img_pad[:, kh:kh + H, kw:kw + W, :]
            for kh in range(KH) for kw in range(KW)]               # 9 x [B,H,W,CIN]
    patches = jnp.stack(taps, axis=0)                              # [9,B,H,W,CIN]
    patches = jnp.transpose(patches, (0, 4, 1, 2, 3))              # [9,CIN,B,H,W]
    patches_t = patches.reshape(KH * KW * CIN, B * H * W)          # [27, 512]
    ones = jnp.ones((1, B * H * W), jnp.float32)
    return jnp.concatenate([patches_t, ones], axis=0).astype(jnp.bfloat16)


@jax.jit
def segmentation_drive(img_nchw, command, prepped):
    """img_nchw: [B, CIN, H, W] (PyTorch convention), command: [B, CMD]."""
    patches_t = _im2col_t(img_nchw)

    vmem = pl.BlockSpec(memory_space=pltpu.MemorySpace.VMEM)
    # No grid: whole problem fits VMEM; at this size grid steps only add
    # overhead.  v7x scaling path: ("parallel",) grid over B / row-tiles.
    out_pad = pl.pallas_call(
        seg_drive_kernel,
        out_shape=jax.ShapeDtypeStruct((B, OUT_PAD), jnp.float32),
        in_specs=[vmem] * 6,
        out_specs=vmem,
        cost_estimate=pl.CostEstimate(flops=_FLOPS, transcendentals=0,
                                      bytes_accessed=_BYTES),
    )(patches_t, command, prepped["w1t"], prepped["wf1x"],
      prepped["wf2"], prepped["const"])
    return out_pad[:, :OUT]


def segmentation_drive_ref(img_nchw, command, params):
    """Pure-JAX f32 reference mirroring the PyTorch forward (NCHW flatten)."""
    img = jnp.transpose(img_nchw, (0, 2, 3, 1))
    img_pad = jnp.pad(img, ((0, 0), (1, 1), (1, 1), (0, 0)))
    acc = jnp.zeros((B, H, W, C1), jnp.float32)
    for kh in range(KH):
        for kw in range(KW):
            acc = acc + jnp.einsum("bhwc,cd->bhwd",
                                   img_pad[:, kh:kh + H, kw:kw + W, :],
                                   params["w1"][kh, kw])
    h1 = jnp.maximum(acc + params["b1"][0], 0.0)
    seg = jnp.einsum("bhwc,cd->bhwd", h1, params["w2"]) + params["b2"][0]
    seg_nchw = jnp.transpose(seg, (0, 3, 1, 2))                    # [B,NC,H,W]
    x = seg_nchw.reshape(B, NC * H * W)                            # PyTorch .view
    h = x @ params["wf1x"] + command @ params["wf1c"] + params["bf1"][0]
    h = jnp.maximum(h, 0.0)
    return h @ params["wf2"] + params["bf2"][0]


if __name__ == "__main__":
    key = jax.random.PRNGKey(0)
    k_img, k_par = jax.random.split(key)

    img = jax.random.normal(k_img, (B, CIN, H, W), jnp.float32)
    command = jax.nn.one_hot(jnp.array([1, 2]), CMD, dtype=jnp.float32)  # [B, CMD]
    params = make_params(k_par)
    prepped = prepare_params(params)      # one-time weight prep, not per-call

    out = segmentation_drive(img, command, prepped)
    out = jax.block_until_ready(out)

    ref = segmentation_drive_ref(img, command, params)
    assert out.shape == (B, OUT)
    assert jnp.allclose(out, ref, atol=1e-2, rtol=1e-2), "mismatch vs reference"

    print("KERNEL_OK")
</pallas_src>

<mosaic_0001>
module attributes {stable_mosaic.version = 11 : i64} {
  func.func @seg_drive_kernel(%arg0: memref<28x512xbf16, #tpu.memory_space<vmem>>, %arg1: memref<2x4xf32, #tpu.memory_space<vmem>>, %arg2: memref<8x28xbf16, #tpu.memory_space<vmem>>, %arg3: memref<2048x32xbf16, #tpu.memory_space<vmem>>, %arg4: memref<32x128xbf16, #tpu.memory_space<vmem>>, %arg5: memref<8x128xf32, #tpu.memory_space<vmem>>, %arg6: memref<2x128xf32, #tpu.memory_space<vmem>>) attributes {dimension_semantics = [], scalar_prefetch = 0 : i64, scratch_operands = 0 : i64, tpu.core_type = #tpu.core_type<tc>} {
    %c0 = arith.constant 0 : index
    %c0_0 = arith.constant 0 : index
    %0 = vector.load %arg2[%c0, %c0_0] : memref<8x28xbf16, #tpu.memory_space<vmem>>, vector<8x28xbf16>
    %c0_1 = arith.constant 0 : index
    %c0_2 = arith.constant 0 : index
    %1 = vector.load %arg0[%c0_1, %c0_2] : memref<28x512xbf16, #tpu.memory_space<vmem>>, vector<28x512xbf16>
    %cst = arith.constant dense<0.000000e+00> : vector<8x512xf32>
    %2 = tpu.matmul %0, %1, %cst {dimension_numbers = #tpu.dot_dimension_numbers<[1], [0], [0], [1], [0, 0, 1, 1], [], []>} : vector<8x28xbf16>, vector<28x512xbf16>, vector<8x512xf32> -> vector<8x512xf32>
    %cst_3 = arith.constant 0.000000e+00 : f32
    %3 = vector.broadcast %cst_3 : f32 to vector<8x512xf32>
    %4 = arith.maximumf %2, %3 : vector<8x512xf32>
    %5 = arith.truncf %4 : vector<8x512xf32> to vector<8x512xbf16>
    %6 = vector.extract_strided_slice %5 {offsets = [0, 0], sizes = [8, 256], strides = [1, 1]} : vector<8x512xbf16> to vector<8x256xbf16>
    %7 = vector.shape_cast %6 : vector<8x256xbf16> to vector<1x2048xbf16>
    %8 = vector.extract_strided_slice %5 {offsets = [0, 256], sizes = [8, 256], strides = [1, 1]} : vector<8x512xbf16> to vector<8x256xbf16>
    %9 = vector.shape_cast %8 : vector<8x256xbf16> to vector<1x2048xbf16>
    %10 = tpu.concatenate %7, %9 in 0 : vector<1x2048xbf16>, vector<1x2048xbf16> -> vector<2x2048xbf16>
    %c0_4 = arith.constant 0 : index
    %c0_5 = arith.constant 0 : index
    %11 = vector.load %arg3[%c0_4, %c0_5] : memref<2048x32xbf16, #tpu.memory_space<vmem>>, vector<2048x32xbf16>
    %cst_6 = arith.constant dense<0.000000e+00> : vector<2x32xf32>
    %12 = tpu.matmul %10, %11, %cst_6 {dimension_numbers = #tpu.dot_dimension_numbers<[1], [0], [0], [1], [0, 0, 1, 1], [], []>} : vector<2x2048xbf16>, vector<2048x32xbf16>, vector<2x32xf32> -> vector<2x32xf32>
    %c2 = arith.constant 2 : index
    %c0_7 = arith.constant 0 : index
    %13 = vector.load %arg5[%c2, %c0_7] : memref<8x128xf32, #tpu.memory_space<vmem>>, vector<4x32xf32>
    %14 = arith.truncf %13 : vector<4x32xf32> to vector<4x32xbf16>
    %c0_8 = arith.constant 0 : index
    %c0_9 = arith.constant 0 : index
    %15 = vector.load %arg1[%c0_8, %c0_9] : memref<2x4xf32, #tpu.memory_space<vmem>>, vector<2x4xf32>
    %16 = arith.truncf %15 : vector<2x4xf32> to vector<2x4xbf16>
    %cst_10 = arith.constant dense<0.000000e+00> : vector<2x32xf32>
    %17 = tpu.matmul %16, %14, %cst_10 {dimension_numbers = #tpu.dot_dimension_numbers<[1], [0], [0], [1], [0, 0, 1, 1], [], []>} : vector<2x4xbf16>, vector<4x32xbf16>, vector<2x32xf32> -> vector<2x32xf32>
    %18 = arith.addf %12, %17 : vector<2x32xf32>
    %c1 = arith.constant 1 : index
    %c0_11 = arith.constant 0 : index
    %19 = vector.load %arg5[%c1, %c0_11] : memref<8x128xf32, #tpu.memory_space<vmem>>, vector<1x32xf32>
    %20 = vector.broadcast %19 : vector<1x32xf32> to vector<2x32xf32>
    %21 = arith.addf %18, %20 : vector<2x32xf32>
    %cst_12 = arith.constant 0.000000e+00 : f32
    %22 = vector.broadcast %cst_12 : f32 to vector<2x32xf32>
    %23 = arith.maximumf %21, %22 : vector<2x32xf32>
    %24 = arith.truncf %23 : vector<2x32xf32> to vector<2x32xbf16>
    %c0_13 = arith.constant 0 : index
    %c0_14 = arith.constant 0 : index
    %25 = vector.load %arg4[%c0_13, %c0_14] : memref<32x128xbf16, #tpu.memory_space<vmem>>, vector<32x128xbf16>
    %cst_15 = arith.constant dense<0.000000e+00> : vector<2x128xf32>
    %26 = tpu.matmul %24, %25, %cst_15 {dimension_numbers = #tpu.dot_dimension_numbers<[1], [0], [0], [1], [0, 0, 1, 1], [], []>} : vector<2x32xbf16>, vector<32x128xbf16>, vector<2x128xf32> -> vector<2x128xf32>
    %c0_16 = arith.constant 0 : index
    %c0_17 = arith.constant 0 : index
    %27 = vector.load %arg5[%c0_16, %c0_17] : memref<8x128xf32, #tpu.memory_space<vmem>>, vector<1x128xf32>
    %28 = vector.broadcast %27 : vector<1x128xf32> to vector<2x128xf32>
    %29 = arith.addf %26, %28 : vector<2x128xf32>
    %c0_18 = arith.constant 0 : index
    %c0_19 = arith.constant 0 : index
    %30 = vector.load %arg6[%c0_18, %c0_19] : memref<2x128xf32, #tpu.memory_space<vmem>>, vector<2x128xf32>
    tpu.vector_store %arg6[%c0_18, %c0_19], %29 {strides = array<i32>} : memref<2x128xf32, #tpu.memory_space<vmem>>, vector<2x128xf32>,
    return
  }
}

</mosaic_0001>

<bundles_post_ra>
// kernel: segmentation_drive.1
= control target key start
LH: loop header
LB: loop body
LE: loop exit
PB: predicated region body
PF: predicated region fallthrough
CT: control target
= control target key end

     0   :  { %vm74_vm0 = vcmask 1045504   ;;  %v2389_v3 = vmov 0   ;;  %vm70_vm1 = vcmask 228352   ;;  %vm650_vm2 = vcmask 1041408   ;;  %s3022_s0 = inlined_call_operand.vmem [shape: bf16[28,512], index: 0, kind: input, shape index: {}]   ;;  %s3023_s1 = inlined_call_operand.vmem [shape: f32[2,4], index: 1, kind: input, shape index: {}]   ;;  %s3024_s2 = inlined_call_operand.vmem [shape: bf16[8,28], index: 2, kind: input, shape index: {}]   ;;  %s3025_s3 = inlined_call_operand.vmem [shape: bf16[2048,32], index: 3, kind: input, shape index: {}]   ;;  %s3026_s4 = inlined_call_operand.vmem [shape: bf16[32,128], index: 4, kind: input, shape index: {}]   ;;  %s3027_s5 = inlined_call_operand.vmem [shape: f32[8,128], index: 5, kind: input, shape index: {}]   ;;  %s3028_s6 = inlined_call_operand.hbm [shape: f32[2,128], index: 6, kind: output, shape index: {}]  }
   0x1   :  { %v2225_v0 = vld [vmem:[%s3022_s0 + $0x24] ss:$16 sps:$4 sm:$0x3f]   ;;  %v2227_v1 = vld [vmem:[%s3022_s0 + $0x2c] ss:$16 sps:$4 sm:$0x3f]   ;;  %119 = vmatprep.mubr.bf16.mxu0 %v2389_v3  ;;  %160 = vmatprep.mubr.bf16.mxu1 %v2389_v3 }
   0x2   :  { %1878 = vmatprep.subr.msk.bf16.mxu0 %vm74_vm0, %v2225_v0  ;;  %v2229_v2 = vld [vmem:[%s3022_s0 + $0x20] ss:$16 sps:$4 sm:$0x3f]   ;;  %v2230_v4 = vld [vmem:[%s3022_s0 + $0x28] ss:$16 sps:$4 sm:$0x3f]   ;;  %1880 = vmatprep.subr.msk.bf16.mxu1 %vm74_vm0, %v2227_v1 }
   0x3   :  { %v2231_v5 = vld [vmem:[%s3022_s0 + $0x4] ss:$16 sps:$4 sm:$0xff]   ;;  %v76_v6 = vsel %vm74_vm0, %v2229_v2, 0  ;;  %v2233_v7 = vld [vmem:[%s3022_s0 + $0xc] ss:$16 sps:$4 sm:$0xff]   ;;  %v82_v8 = vsel %vm74_vm0, %v2230_v4, 0 }
   0x4   :  { %100 = vmatpush1.bf16.msra.mxu0 %v76_v6  ;;  %v2235_v9 = vld [vmem:[%s3022_s0] ss:$16 sps:$4 sm:$0xff]   ;;  %141 = vmatpush1.bf16.msra.mxu1 %v82_v8  ;;  %v2236_v10 = vld [vmem:[%s3022_s0 + $0x8] ss:$16 sps:$4 sm:$0xff]   ;;  %v2390_v15 = vmov 0.0   ;;  %vm2391_vm3 = vmmov 0  }
   0x5   :  { %101 = vmatprep.subr.bf16.mxu0 %v2231_v5  ;;  %v642_v11 = vld [vmem:[%s3027_s5 + $0x2] sm:$0xf]  ;;  %142 = vmatprep.subr.bf16.mxu1 %v2233_v7  ;;  %v2237_v13 = vld [vmem:[%s3025_s3 + $0x78] sm:$0xff]   ;;  %v2241_v19 = vld [vmem:[%s3025_s3 + $0x70] sm:$0xff]   ;;  %vm646_vm4 = vcmask 31744  }
   0x6   :  { %v643_v12 = vpack.c.bf16 %v642_v11, %v642_v11  ;;  %v25_v14 = vld [vmem:[%s3024_s2] sm:$0xf]  ;;  %v2238_v17 = vld [vmem:[%s3025_s3 + $0xf8] sm:$0xff]   ;;  %v2243_v21 = vld [vmem:[%s3025_s3 + $0x30] sm:$0xff]  }
   0x7   :  { %v2239_v18 = vld [vmem:[%s3025_s3 + $0x38] sm:$0xff]   ;;  %v644_v20 = vld [vmem:[%s3023_s1] sm:$0x3]  ;;  %v2245_v23 = vld [vmem:[%s3025_s3 + $0x68] sm:$0xff]  }
   0x8   :  { %102 = vmatpush1.bf16.msra.mxu0 %v2235_v9  ;;  %143 = vmatpush1.bf16.msra.mxu1 %v2236_v10  ;;  %v652_v16 = vsel %vm650_vm2, %v643_v12, 0  ;;  %v645_v22 = vpack.c.bf16 %v644_v20, %v644_v20  ;;  %v2240_v24 = vld [vmem:[%s3025_s3 + $0xb8] sm:$0xff]   ;;  %v2242_v25 = vld [vmem:[%s3025_s3 + $0xf0] sm:$0xff]   ;;  %v2247_v27 = vld [vmem:[%s3025_s3 + $0x28] sm:$0xff]  }
   0x9   :  { %2207 = vmatprep.subr.bf16.mxu0 %v2390_v15  ;;  %2028 = vmatprep.subr.bf16.mxu1 %v2237_v13  ;;  %v2244_v26 = vld [vmem:[%s3025_s3 + $0xb0] sm:$0xff]   ;;  %v2246_v28 = vld [vmem:[%s3025_s3 + $0xe8] sm:$0xff]   ;;  %v2249_v30 = vld [vmem:[%s3025_s3 + $0x60] sm:$0xff]  }
   0xa   :  { %v2248_v29 = vld [vmem:[%s3025_s3 + $0xa8] sm:$0xff]   ;;  %v2250_v31 = vld [vmem:[%s3025_s3 + $0xe0] sm:$0xff]   ;;  %v2253_v34 = vld [vmem:[%s3025_s3 + $0x58] sm:$0xff]  }
   0xb   :  { %1879 = vmatmul.mubr.msk.bf16.vlgmr.msra.gmra.mxu0 %vm70_vm1, %v25_v14  ;;  %1881 = vmatmul.mubr.msk.bf16.vlgmr.msra.gmra.mxu1 %vm70_vm1, %v25_v14  ;;  %v2251_v32 = vld [vmem:[%s3025_s3 + $0x20] sm:$0xff]   ;;  %v2254_v35 = vld [vmem:[%s3025_s3 + $0xd8] sm:$0xff]   ;;  %v2257_v38 = vld [vmem:[%s3025_s3 + $0x50] sm:$0xff]  }
   0xc   :  { %2208 = vmatpush3.bf16.msra.mxu0 %v652_v16  ;;  %2209 = vmatprep.mubr.msk.bf16.mxu0 %vm2391_vm3, %v2390_v15  ;;  %v2252_v33 = vld [vmem:[%s3025_s3 + $0xa0] sm:$0xff]   ;;  %v2255_v36 = vld [vmem:[%s3025_s3 + $0x18] sm:$0xff]   ;;  %v2258_v39 = vld [vmem:[%s3025_s3 + $0xd0] sm:$0xff]  }
   0xd   :  { %2050 = vmatprep.subr.bf16.mxu0 %v2238_v17  ;;  %2029 = vmatpush3.bf16.msra.mxu1 %v2239_v18  ;;  %v2256_v37 = vld [vmem:[%s3025_s3 + $0x98] sm:$0xff]   ;;  %v2259_v40 = vld [vmem:[%s3025_s3 + $0x10] sm:$0xff]   ;;  %v2261_v42 = vld [vmem:[%s3025_s3 + $0x48] sm:$0xff]  }
   0xe   :  { %2030 = vmatprep.subr.bf16.mxu1 %v2241_v19  ;;  %v2260_v41 = vld [vmem:[%s3025_s3 + $0x90] sm:$0xff]   ;;  %v2262_v43 = vld [vmem:[%s3025_s3 + $0xc8] sm:$0xff]   ;;  %v2265_v46 = vld [vmem:[%s3025_s3 + $0x40] sm:$0xff]  }
   0xf   :  { %v2263_v44 = vld [vmem:[%s3025_s3 + $0x8] sm:$0xff]   ;;  %v2266_v47 = vld [vmem:[%s3025_s3 + $0xc0] sm:$0xff]   ;;  %v2269_v50 = vld [vmem:[%s3025_s3 + $0x178] sm:$0xff]  }
  0x10   :  { %v2264_v45 = vld [vmem:[%s3025_s3 + $0x88] sm:$0xff]   ;;  %v2267_v48 = vld [vmem:[%s3025_s3] sm:$0xff]   ;;  %v2270_v51 = vld [vmem:[%s3025_s3 + $0x1f8] sm:$0xff]  }
  0x11   :  { %2031 = vmatpush3.bf16.msra.mxu1 %v2243_v21  ;;  %v2268_v49 = vld [vmem:[%s3025_s3 + $0x80] sm:$0xff]  }
  0x12   :  { %2032 = vmatprep.subr.bf16.mxu1 %v2245_v23 }
  0x13   :  { %2210 = vmatmul.mubr.msk.bf16.vlgmr.msra.gmra.mxu0 %vm646_vm4, %v645_v22 }
  0x14   :  { %2051 = vmatpush3.bf16.msra.mxu0 %v2240_v24 }
  0x15   :  { %2052 = vmatprep.subr.bf16.mxu0 %v2242_v25  ;;  %2033 = vmatpush3.bf16.msra.mxu1 %v2247_v27 }
  0x16   :  { %2034 = vmatprep.subr.bf16.mxu1 %v2249_v30 }
  0x18   :  { %2053 = vmatpush3.bf16.msra.mxu0 %v2244_v26 }
  0x19   :  { %2054 = vmatprep.subr.bf16.mxu0 %v2246_v28  ;;  %2035 = vmatpush3.bf16.msra.mxu1 %v2251_v32 }
  0x1a   :  { %2036 = vmatprep.subr.bf16.mxu1 %v2253_v34 }
  0x1c   :  { %2055 = vmatpush3.bf16.msra.mxu0 %v2248_v29 }
  0x1d   :  { %2056 = vmatprep.subr.bf16.mxu0 %v2250_v31  ;;  %2037 = vmatpush3.bf16.msra.mxu1 %v2255_v36 }
  0x1e   :  { %2038 = vmatprep.subr.bf16.mxu1 %v2257_v38 }
  0x20   :  { %2057 = vmatpush3.bf16.msra.mxu0 %v2252_v33 }
  0x21   :  { %2058 = vmatprep.subr.bf16.mxu0 %v2254_v35  ;;  %2039 = vmatpush3.bf16.msra.mxu1 %v2259_v40 }
  0x22   :  { %2040 = vmatprep.subr.bf16.mxu1 %v2261_v42 }
  0x24   :  { %2059 = vmatpush3.bf16.msra.mxu0 %v2256_v37 }
  0x25   :  { %2060 = vmatprep.subr.bf16.mxu0 %v2258_v39  ;;  %2041 = vmatpush3.bf16.msra.mxu1 %v2263_v44 }
  0x26   :  { %2042 = vmatprep.subr.bf16.mxu1 %v2265_v46 }
  0x28   :  { %2061 = vmatpush3.bf16.msra.mxu0 %v2260_v41 }
  0x29   :  { %2062 = vmatprep.subr.bf16.mxu0 %v2262_v43  ;;  %2043 = vmatpush3.bf16.msra.mxu1 %v2267_v48 }
  0x2a   :  { %2072 = vmatprep.subr.bf16.mxu1 %v2269_v50 }
  0x2c   :  { %2063 = vmatpush3.bf16.msra.mxu0 %v2264_v45 }
  0x2d   :  { %2064 = vmatprep.subr.bf16.mxu0 %v2266_v47 }
  0x30   :  { %2065 = vmatpush3.bf16.msra.mxu0 %v2268_v49 }
  0x31   :  { %2094 = vmatprep.subr.bf16.mxu0 %v2270_v51 }
  0x32   :  { %11 = vsyncpa [#allocation3], 0  ;;  %v205_v63 = vlaneseq  ;;  %vm367_vm5 = vcmask 1040384   ;;  %vm368_vm6 = vsmask.f32 256  ;;  %v2271_v36 = vld [vmem:[%s3025_s3 + $0x138] sm:$0xff]  }
  0x33   :  { %vm2594_vm7 = vmand %vm367_vm5, %vm368_vm6  ;;  %v2272_v37 = vld [vmem:[%s3025_s3 + $0x1b8] sm:$0xff]   ;;  %v2273_v47 = vld [vmem:[%s3025_s3 + $0x170] sm:$0xff]   ;;  %vm1811_vm8 = vcmask 261120   ;;  %s2392_s11 = smov [#allocation2]  }
  0x34   :  { %v2568_v7 = vshrl.u32 %v205_v63, 7  ;;  %v2274_v48 = vld [vmem:[%s3025_s3 + $0x1f0] sm:$0xff]   ;;  %v2310_v27 = vld [vmem:[%s3025_s3 + $0x2e8] sm:$0xff]   ;;  %s1862_s12 = sshll.u32 %s2392_s11, 4  ;;  %s1863_s12 = int_to_ptr.vmem [resolvable:$true] %s1862_s12 }
  0x35   :  { %s2367_s13 = scalar_lea.vmem %s1863_s12, 32  ;;  %p2372_p1 = scmp.lt.s32.totalorder %s1863_s12, %s1863_s12 }
  0x36   :  { %v2571_v14 = vsub.s32 1, %v2568_v7  ;;  %v2574_v16 = vsub.s32 3, %v2568_v7  ;;  %v2577_v17 = vsub.s32 0, %v2568_v7  ;;  %v2582_v21 = vsub.s32 2, %v2568_v7  ;;  %p2368_p0 = scmp.ne.s32.totalorder %s1863_s12, %s2367_s13  ;;  %p2373_p2 = scmp.lt.s32.totalorder %s2367_s13, %s2367_s13 }
  0x37   :  { %v2585_v22 = vsub.s32 5, %v2568_v7  ;;  %v2590_v24 = vsub.s32 7, %v2568_v7 }
  0x38   :  { %p2374_p3 = por %p2373_p2, %p2372_p1 }
  0x3a   :  { %p2375_p4 = pnand %p2374_p3, %p2368_p0 }
  0xcb   :  { %v121_v52 = vpop.f32.mrf.mxu0  ;;  %v162_v53 = vpop.f32.mrf.mxu1 }
  0xcc   :  { %v169_v55 = vmax.f32 %v121_v52, 0.0  ;;  %v171_v58 = vmax.f32 %v162_v53, 0.0  ;;  %v2275_v52 = vld [vmem:[%s3025_s3 + $0x130] sm:$0xff]  }
  0xcd   :  { %v123_v54 = vpop.f32.mrf.mxu0  ;;  %v164_v57 = vpop.f32.mrf.mxu1  ;;  %v2276_v53 = vld [vmem:[%s3025_s3 + $0x1b0] sm:$0xff]  }
  0xce   :  { %v170_v56 = vmax.f32 %v123_v54, 0.0  ;;  %v172_v59 = vmax.f32 %v164_v57, 0.0  ;;  %v2277_v54 = vld [vmem:[%s3025_s3 + $0x168] sm:$0xff]  }
  0xcf   :  { %v125_v60 = vpop.f32.mrf.mxu0  ;;  %v166_v62 = vpop.f32.mrf.mxu1 }
  0xd0   :  { %v2024_v61 = vpack.c.bf16 %v170_v56, %v169_v55  ;;  %v2025_v0 = vpack.c.bf16 %v172_v59, %v171_v58  ;;  %v2278_v55 = vld [vmem:[%s3025_s3 + $0x1e8] sm:$0xff]   ;;  %v2675_v62 = vsub.s32 4, %v2568_v7 }
  0xd1   :  { %v126_v1 = vpop.f32.mrf.mxu0  ;;  %v167_v3 = vpop.f32.mrf.mxu1  ;;  %v2279_v60 = vld [vmem:[%s3025_s3 + $0x128] sm:$0xff]  }
  0xd2   :  { %v183_v2 = vunpack.i.h.s16 %v2024_v61  ;;  %v196_v4 = vunpack.i.h.s16 %v2025_v0  ;;  %v2281_v1 = vld [vmem:[%s3025_s3 + $0x160] sm:$0xff]   ;;  %v2688_v3 = vsub.s32 6, %v2568_v7 }
  0xd3   :  { %v2566_v5 = vpop.f32.mrf.mxu0 }
  0xd4   :  { %v1883_v6 = vpack.c.b16 %v183_v2, %v2024_v61  ;;  %v1886_v8 = vpack.c.b16 %v196_v4, %v2025_v0  ;;  %v2280_v61 = vld [vmem:[%s3025_s3 + $0x1a8] sm:$0xff]   ;;  %v2282_v2 = vld [vmem:[%s3025_s3 + $0x1e0] sm:$0xff]  }
  0xd5   :  { %v2211_v9 = vpop.f32.mrf.mxu0 }
  0xd6   :  { %v186_v10 = vunpack.i.h.s16 %v1883_v6  ;;  %v199_v11 = vunpack.i.h.s16 %v1886_v8 }
  0xd7   :  { %v691_v12 = vpop.f32.mrf.mxu0 }
  0xd8   :  { %v1884_v13 = vpack.c.b16 %v186_v10, %v1883_v6  ;;  %v1887_v18 = vpack.c.b16 %v199_v11, %v1886_v8 }
  0xd9   :  { %v2212_v19 = vpop.f32.mrf.mxu0 }
  0xda   :  { %v2579_v20 = vpack.i.b16 %v1884_v13, %v1884_v13  ;;  %v2587_v23 = vpack.i.b16 %v1887_v18, %v1887_v18  ;;  %v189_v25 = vunpack.i.h.s16 %v1884_v13  ;;  %v202_v30 = vunpack.i.h.s16 %v1887_v18  ;;  %v2284_v18 = vld [vmem:[%s3025_s3 + $0x1a0] sm:$0xff]  }
  0xdc   :  { %v212_v26 = vrot.slane %v2579_v20, %v2571_v14  ;;  %v220_v28 = vrot.slane %v2579_v20, %v2574_v16  ;;  %v208_v29 = vrot.slane %v2579_v20, %v2577_v17  ;;  %v294_v31 = vrot.slane %v2587_v23, %v2571_v14 }
  0xdd   :  { %v302_v32 = vrot.slane %v2587_v23, %v2574_v16  ;;  %v290_v33 = vrot.slane %v2587_v23, %v2577_v17  ;;  %v216_v34 = vrot.slane %v2579_v20, %v2582_v21  ;;  %v298_v35 = vrot.slane %v2587_v23, %v2582_v21 }
  0xde   :  { %v228_v38 = vrot.slane %v2579_v20, %v2585_v22  ;;  %v310_v39 = vrot.slane %v2587_v23, %v2585_v22  ;;  %v371_v40 = vsel %vm2594_vm7, %v212_v26, %v294_v31  ;;  %v236_v43 = vrot.slane %v2579_v20, %v2590_v24  ;;  %v2287_v26 = vld [vmem:[%s3025_s3 + $0x118] sm:$0xff]   ;;  %v2291_v31 = vld [vmem:[%s3025_s3 + $0x110] sm:$0xff]  }
  0xdf   :  { %v373_v41 = vsel %vm2594_vm7, %v220_v28, %v302_v32  ;;  %v370_v42 = vsel %vm2594_vm7, %v208_v29, %v290_v33  ;;  %v2630_v44 = vpack.i.b16 %v189_v25, %v189_v25  ;;  %1494 = vmatprep.mubr.bf16.mxu1 %v371_v40  ;;  %v372_v45 = vsel %vm2594_vm7, %v216_v34, %v298_v35  ;;  %v2288_v28 = vld [vmem:[%s3025_s3 + $0x198] sm:$0xff]   ;;  %v2289_v29 = vld [vmem:[%s3025_s3 + $0x150] sm:$0xff]   ;;  %v2293_v33 = vld [vmem:[%s3025_s3 + $0x148] sm:$0xff]  }
  0xe0   :  { %1534 = vmatprep.mubr.bf16.mxu0 %v373_v41  ;;  %v318_v46 = vrot.slane %v2587_v23, %v2590_v24  ;;  %v2642_v49 = vpack.i.b16 %v202_v30, %v202_v30  ;;  %1495 = vmatmul.mubr.bf16.vlgmr.msra.gmra.mxu1 %v370_v42  ;;  %v375_v50 = vsel %vm2594_vm7, %v228_v38, %v310_v39  ;;  %v2290_v30 = vld [vmem:[%s3025_s3 + $0x1d0] sm:$0xff]   ;;  %v2294_v34 = vld [vmem:[%s3025_s3 + $0x1c8] sm:$0xff]   ;;  %v2298_v38 = vld [vmem:[%s3025_s3 + $0x1c0] sm:$0xff]  }
  0xe1   :  { %1535 = vmatmul.mubr.bf16.vlgmr.msra.gmra.mxu0 %v372_v45  ;;  %2073 = vmatpush3.bf16.msra.mxu1 %v2271_v36  ;;  %v240_v56 = vrot.slane %v2630_v44, %v2577_v17  ;;  %v248_v58 = vrot.slane %v2630_v44, %v2582_v21  ;;  %v260_v63 = vrot.slane %v2630_v44, %v2585_v22  ;;  %v2292_v32 = vld [vmem:[%s3025_s3 + $0x190] sm:$0xff]   ;;  %v2295_v35 = vld [vmem:[%s3025_s3 + $0x108] sm:$0xff]   ;;  %v2299_v39 = vld [vmem:[%s3025_s3 + $0x100] sm:$0xff]  }
  0xe2   :  { %2095 = vmatpush3.bf16.msra.mxu0 %v2272_v37  ;;  %v377_v51 = vsel %vm2594_vm7, %v236_v43, %v318_v46  ;;  %1574 = vmatprep.mubr.bf16.mxu1 %v375_v50  ;;  %v322_v57 = vrot.slane %v2642_v49, %v2577_v17  ;;  %v330_v59 = vrot.slane %v2642_v49, %v2582_v21  ;;  %v2283_v17 = vld [vmem:[%s3025_s3 + $0x120] sm:$0xff]   ;;  %v2296_v36 = vld [vmem:[%s3025_s3 + $0x188] sm:$0xff]   ;;  %v2301_v41 = vld [vmem:[%s3025_s3 + $0x278] sm:$0xff]  }
  0xe3   :  { %1614 = vmatprep.mubr.bf16.mxu0 %v377_v51  ;;  %2074 = vmatprep.subr.bf16.mxu1 %v2273_v47  ;;  %v342_v0 = vrot.slane %v2642_v49, %v2585_v22  ;;  %v268_v8 = vrot.slane %v2630_v44, %v2590_v24  ;;  %v350_v10 = vrot.slane %v2642_v49, %v2590_v24  ;;  %v2285_v22 = vld [vmem:[%s3025_s3 + $0x158] sm:$0xff]   ;;  %v2297_v37 = vld [vmem:[%s3025_s3 + $0x140] sm:$0xff]  }
  0xe4   :  { %2096 = vmatprep.subr.bf16.mxu0 %v2274_v48  ;;  %v2692_v4 = vsel %vm2594_vm7, %v240_v56, %v322_v57  ;;  %v2696_v6 = vsel %vm2594_vm7, %v248_v58, %v330_v59  ;;  %v256_v7 = vrot.slane %v2630_v44, %v2675_v62  ;;  %v338_v11 = vrot.slane %v2642_v49, %v2675_v62  ;;  %v2286_v24 = vld [vmem:[%s3025_s3 + $0x1d8] sm:$0xff]   ;;  %v2300_v40 = vld [vmem:[%s3025_s3 + $0x180] sm:$0xff]   ;;  %v2308_v56 = vld [vmem:[%s3025_s3 + $0x2b0] sm:$0xff]  }
  0xe5   :  { %2075 = vmatpush3.bf16.msra.mxu1 %v2275_v52  ;;  %v2702_v9 = vsel %vm2594_vm7, %v260_v63, %v342_v0  ;;  %v264_v12 = vrot.slane %v2630_v44, %v2688_v3  ;;  %v346_v13 = vrot.slane %v2642_v49, %v2688_v3  ;;  %v2722_v19 = vsel %vm2594_vm7, %v268_v8, %v350_v10  ;;  %v2302_v42 = vld [vmem:[%s3025_s3 + $0x2f8] sm:$0xff]   ;;  %v2309_v57 = vld [vmem:[%s3025_s3 + $0x268] sm:$0xff]   ;;  %v2316_v63 = vld [vmem:[%s3025_s3 + $0x2a0] sm:$0xff]  }
  0xe6   :  { %2097 = vmatpush3.bf16.msra.mxu0 %v2276_v53  ;;  %2076 = vmatprep.subr.bf16.mxu1 %v2277_v54  ;;  %v2726_v21 = vsel %vm2594_vm7, %v256_v7, %v338_v11  ;;  %v224_v43 = vrot.slane %v2579_v20, %v2675_v62  ;;  %v306_v45 = vrot.slane %v2587_v23, %v2675_v62  ;;  %v2303_v51 = vld [vmem:[%s3025_s3 + $0x238] sm:$0xff]   ;;  %v2305_v54 = vld [vmem:[%s3025_s3 + $0x270] sm:$0xff]   ;;  %v2311_v58 = vld [vmem:[%s3025_s3 + $0x228] sm:$0xff]  }
  0xe7   :  { %2098 = vmatprep.subr.bf16.mxu0 %v2278_v55  ;;  %v2736_v25 = vsel %vm2594_vm7, %v264_v12, %v346_v13  ;;  %v232_v46 = vrot.slane %v2579_v20, %v2688_v3  ;;  %v314_v47 = vrot.slane %v2587_v23, %v2688_v3  ;;  %v244_v48 = vrot.slane %v2630_v44, %v2571_v14  ;;  %v2304_v23 = vld [vmem:[%s3025_s3 + $0x2b8] sm:$0xff]   ;;  %v2307_v55 = vld [vmem:[%s3025_s3 + $0x230] sm:$0xff]   ;;  %v2312_v59 = vld [vmem:[%s3025_s3 + $0x2a8] sm:$0xff]  }
  0xe8   :  { %v326_v50 = vrot.slane %v2642_v49, %v2571_v14  ;;  %v252_v52 = vrot.slane %v2630_v44, %v2574_v16  ;;  %v334_v20 = vrot.slane %v2642_v49, %v2574_v16  ;;  %v374_v14 = vsel %vm2594_vm7, %v224_v43, %v306_v45  ;;  %v2306_v16 = vld [vmem:[%s3025_s3 + $0x2f0] sm:$0xff]   ;;  %v2315_v62 = vld [vmem:[%s3025_s3 + $0x220] sm:$0xff]   ;;  %v2317_v0 = vld [vmem:[%s3025_s3 + $0x258] sm:$0xff]  }
  0xe9   :  { %2077 = vmatpush3.bf16.msra.mxu1 %v2279_v60  ;;  %v376_v53 = vsel %vm2594_vm7, %v232_v46, %v314_v47  ;;  %v2313_v60 = vld [vmem:[%s3025_s3 + $0x260] sm:$0xff]   ;;  %v2320_v3 = vld [vmem:[%s3025_s3 + $0x298] sm:$0xff]   ;;  %v2321_v8 = vld [vmem:[%s3025_s3 + $0x250] sm:$0xff]  }
  0xea   :  { %2099 = vmatpush3.bf16.msra.mxu0 %v2280_v61  ;;  %2078 = vmatprep.subr.bf16.mxu1 %v2281_v1  ;;  %v379_v44 = vsel %vm2594_vm7, %v244_v48, %v326_v50  ;;  %v381_v49 = vsel %vm2594_vm7, %v252_v52, %v334_v20  ;;  %v2314_v61 = vld [vmem:[%s3025_s3 + $0x2e0] sm:$0xff]   ;;  %v2318_v1 = vld [vmem:[%s3025_s3 + $0x2d8] sm:$0xff]   ;;  %v2322_v10 = vld [vmem:[%s3025_s3 + $0x2d0] sm:$0xff]  }
  0xeb   :  { %2100 = vmatprep.subr.bf16.mxu0 %v2282_v2  ;;  %v2319_v2 = vld [vmem:[%s3025_s3 + $0x218] sm:$0xff]   ;;  %v2323_v7 = vld [vmem:[%s3025_s3 + $0x210] sm:$0xff]   ;;  %v2325_v12 = vld [vmem:[%s3025_s3 + $0x248] sm:$0xff]  }
  0xec   :  { %v2324_v11 = vld [vmem:[%s3025_s3 + $0x290] sm:$0xff]   ;;  %v2326_v13 = vld [vmem:[%s3025_s3 + $0x2c8] sm:$0xff]   ;;  %v2351_v43 = vld [vmem:[%s3025_s3 + $0x318] sm:$0xff]  }
  0xed   :  { %2079 = vmatpush3.bf16.msra.mxu1 %v2283_v17  ;;  %v2327_v17 = vld [vmem:[%s3025_s3 + $0x208] sm:$0xff]   ;;  %v2352_v45 = vld [vmem:[%s3025_s3 + $0x398] sm:$0xff]   ;;  %v2353_v46 = vld [vmem:[%s3025_s3 + $0x350] sm:$0xff]  }
  0xee   :  { %2101 = vmatpush3.bf16.msra.mxu0 %v2284_v18  ;;  %2080 = vmatprep.subr.bf16.mxu1 %v2285_v22  ;;  %v2328_v18 = vld [vmem:[%s3025_s3 + $0x288] sm:$0xff]   ;;  %v2329_v22 = vld [vmem:[%s3025_s3 + $0x240] sm:$0xff]   ;;  %v2354_v47 = vld [vmem:[%s3025_s3 + $0x3d0] sm:$0xff]  }
  0xef   :  { %2102 = vmatprep.subr.bf16.mxu0 %v2286_v24  ;;  %v2330_v24 = vld [vmem:[%s3025_s3 + $0x2c0] sm:$0xff]   ;;  %v2355_v48 = vld [vmem:[%s3025_s3 + $0x310] sm:$0xff]   ;;  %v2358_v52 = vld [vmem:[%s3025_s3 + $0x3c8] sm:$0xff]  }
  0xf0   :  { %v2356_v50 = vld [vmem:[%s3025_s3 + $0x390] sm:$0xff]   ;;  %v2359_v20 = vld [vmem:[%s3025_s3 + $0x308] sm:$0xff]  }
  0xf1   :  { %2081 = vmatpush3.bf16.msra.mxu1 %v2287_v26  ;;  %v2331_v26 = vld [vmem:[%s3025_s3 + $0x200] sm:$0xff]  }
  0xf2   :  { %2103 = vmatpush3.bf16.msra.mxu0 %v2288_v28  ;;  %2082 = vmatprep.subr.bf16.mxu1 %v2289_v29  ;;  %v2332_v28 = vld [vmem:[%s3025_s3 + $0x280] sm:$0xff]   ;;  %v2333_v29 = vld [vmem:[%s3025_s3 + $0x378] sm:$0xff]  }
  0xf3   :  { %2104 = vmatprep.subr.bf16.mxu0 %v2290_v30  ;;  %v2334_v30 = vld [vmem:[%s3025_s3 + $0x3f8] sm:$0xff]  }
  0xf5   :  { %2083 = vmatpush3.bf16.msra.mxu1 %v2291_v31  ;;  %v2335_v31 = vld [vmem:[%s3025_s3 + $0x338] sm:$0xff]  }
  0xf6   :  { %2105 = vmatpush3.bf16.msra.mxu0 %v2292_v32  ;;  %2084 = vmatprep.subr.bf16.mxu1 %v2293_v33  ;;  %v2336_v32 = vld [vmem:[%s3025_s3 + $0x3b8] sm:$0xff]   ;;  %v2337_v33 = vld [vmem:[%s3025_s3 + $0x370] sm:$0xff]  }
  0xf7   :  { %2106 = vmatprep.subr.bf16.mxu0 %v2294_v34  ;;  %v2338_v34 = vld [vmem:[%s3025_s3 + $0x3f0] sm:$0xff]  }
  0xf9   :  { %2085 = vmatpush3.bf16.msra.mxu1 %v2295_v35  ;;  %v2339_v35 = vld [vmem:[%s3025_s3 + $0x330] sm:$0xff]  }
  0xfa   :  { %2107 = vmatpush3.bf16.msra.mxu0 %v2296_v36  ;;  %2086 = vmatprep.subr.bf16.mxu1 %v2297_v37  ;;  %v2340_v36 = vld [vmem:[%s3025_s3 + $0x3b0] sm:$0xff]   ;;  %v2344_v37 = vld [vmem:[%s3025_s3 + $0x3a8] sm:$0xff]  }
  0xfb   :  { %2108 = vmatprep.subr.bf16.mxu0 %v2298_v38  ;;  %v2346_v38 = vld [vmem:[%s3025_s3 + $0x3e0] sm:$0xff]  }
  0xfd   :  { %2087 = vmatpush3.bf16.msra.mxu1 %v2299_v39  ;;  %v2347_v39 = vld [vmem:[%s3025_s3 + $0x320] sm:$0xff]  }
  0xfe   :  { %2109 = vmatpush3.bf16.msra.mxu0 %v2300_v40  ;;  %2116 = vmatprep.subr.bf16.mxu1 %v2301_v41  ;;  %v2348_v40 = vld [vmem:[%s3025_s3 + $0x3a0] sm:$0xff]   ;;  %v2349_v41 = vld [vmem:[%s3025_s3 + $0x358] sm:$0xff]  }
  0xff   :  { %2138 = vmatprep.subr.bf16.mxu0 %v2302_v42  ;;  %v2350_v42 = vld [vmem:[%s3025_s3 + $0x3d8] sm:$0xff]  }
 0x100   :  { %1575 = vmatmul.mubr.bf16.vlgmr.msra.gmra.mxu1 %v374_v14  ;;  %v2361_v14 = vld [vmem:[%s3025_s3 + $0x340] sm:$0xff]  }
 0x101   :  { %1615 = vmatmul.mubr.bf16.vlgmr.msra.gmra.mxu0 %v376_v53  ;;  %2117 = vmatpush3.bf16.msra.mxu1 %v2303_v51  ;;  %v2357_v51 = vld [vmem:[%s3025_s3 + $0x348] sm:$0xff]   ;;  %v2362_v53 = vld [vmem:[%s3025_s3 + $0x3c0] sm:$0xff]  }
 0x102   :  { %1654 = vmatprep.mubr.bf16.mxu1 %v379_v44  ;;  %2139 = vmatpush3.bf16.msra.mxu0 %v2304_v23  ;;  %v2360_v23 = vld [vmem:[%s3025_s3 + $0x388] sm:$0xff]  }
 0x103   :  { %1694 = vmatprep.mubr.bf16.mxu0 %v381_v49  ;;  %2118 = vmatprep.subr.bf16.mxu1 %v2305_v54  ;;  %v2363_v54 = vld [vmem:[%s3025_s3 + $0x300] sm:$0xff]   ;;  %v2365_v44 = vld [vmem:[%s3026_s4 + $0x8] sm:$0xff]  }
 0x104   :  { %2140 = vmatprep.subr.bf16.mxu0 %v2306_v16  ;;  %v2364_v16 = vld [vmem:[%s3025_s3 + $0x380] sm:$0xff]  }
 0x105   :  { %2119 = vmatpush3.bf16.msra.mxu1 %v2307_v55  ;;  %v2366_v49 = vld [vmem:[%s3026_s4] sm:$0xff]  }
 0x106   :  { %2141 = vmatpush3.bf16.msra.mxu0 %v2308_v56  ;;  %2120 = vmatprep.subr.bf16.mxu1 %v2309_v57 }
 0x107   :  { %2142 = vmatprep.subr.bf16.mxu0 %v2310_v27 }
 0x109   :  { %2121 = vmatpush3.bf16.msra.mxu1 %v2311_v58 }
 0x10a   :  { %2143 = vmatpush3.bf16.msra.mxu0 %v2312_v59  ;;  %2122 = vmatprep.subr.bf16.mxu1 %v2313_v60 }
 0x10b   :  { %2144 = vmatprep.subr.bf16.mxu0 %v2314_v61 }
 0x10d   :  { %2123 = vmatpush3.bf16.msra.mxu1 %v2315_v62 }
 0x10e   :  { %2145 = vmatpush3.bf16.msra.mxu0 %v2316_v63  ;;  %2124 = vmatprep.subr.bf16.mxu1 %v2317_v0 }
 0x10f   :  { %2146 = vmatprep.subr.bf16.mxu0 %v2318_v1 }
 0x111   :  { %2125 = vmatpush3.bf16.msra.mxu1 %v2319_v2 }
 0x112   :  { %2147 = vmatpush3.bf16.msra.mxu0 %v2320_v3  ;;  %2126 = vmatprep.subr.bf16.mxu1 %v2321_v8 }
 0x113   :  { %2148 = vmatprep.subr.bf16.mxu0 %v2322_v10 }
 0x115   :  { %2127 = vmatpush3.bf16.msra.mxu1 %v2323_v7 }
 0x116   :  { %2149 = vmatpush3.bf16.msra.mxu0 %v2324_v11  ;;  %2128 = vmatprep.subr.bf16.mxu1 %v2325_v12 }
 0x117   :  { %2150 = vmatprep.subr.bf16.mxu0 %v2326_v13 }
 0x119   :  { %2129 = vmatpush3.bf16.msra.mxu1 %v2327_v17 }
 0x11a   :  { %2151 = vmatpush3.bf16.msra.mxu0 %v2328_v18  ;;  %2130 = vmatprep.subr.bf16.mxu1 %v2329_v22 }
 0x11b   :  { %2152 = vmatprep.subr.bf16.mxu0 %v2330_v24 }
 0x11d   :  { %2131 = vmatpush3.bf16.msra.mxu1 %v2331_v26 }
 0x11e   :  { %2153 = vmatpush3.bf16.msra.mxu0 %v2332_v28  ;;  %2160 = vmatprep.subr.bf16.mxu1 %v2333_v29 }
 0x11f   :  { %2182 = vmatprep.subr.bf16.mxu0 %v2334_v30 }
 0x120   :  { %1655 = vmatmul.mubr.bf16.vlgmr.msra.gmra.mxu1 %v2692_v4  ;;  %v2341_v4 = vld [vmem:[%s3025_s3 + $0x368] sm:$0xff]  }
 0x121   :  { %1695 = vmatmul.mubr.bf16.vlgmr.msra.gmra.mxu0 %v2696_v6  ;;  %2161 = vmatpush3.bf16.msra.mxu1 %v2335_v31  ;;  %v2342_v6 = vld [vmem:[%s3025_s3 + $0x3e8] sm:$0xff]  }
 0x122   :  { %1734 = vmatprep.mubr.bf16.mxu1 %v2702_v9  ;;  %2183 = vmatpush3.bf16.msra.mxu0 %v2336_v32  ;;  %v2343_v9 = vld [vmem:[%s3025_s3 + $0x328] sm:$0xff]  }
 0x123   :  { %1774 = vmatprep.mubr.bf16.mxu0 %v2722_v19  ;;  %2162 = vmatprep.subr.bf16.mxu1 %v2337_v33  ;;  %v2345_v19 = vld [vmem:[%s3025_s3 + $0x360] sm:$0xff]  }
 0x124   :  { %2184 = vmatprep.subr.bf16.mxu0 %v2338_v34 }
 0x125   :  { %2163 = vmatpush3.bf16.msra.mxu1 %v2339_v35 }
 0x126   :  { %2185 = vmatpush3.bf16.msra.mxu0 %v2340_v36  ;;  %2164 = vmatprep.subr.bf16.mxu1 %v2341_v4 }
 0x127   :  { %2186 = vmatprep.subr.bf16.mxu0 %v2342_v6 }
 0x129   :  { %2165 = vmatpush3.bf16.msra.mxu1 %v2343_v9 }
 0x12a   :  { %2187 = vmatpush3.bf16.msra.mxu0 %v2344_v37  ;;  %2166 = vmatprep.subr.bf16.mxu1 %v2345_v19 }
 0x12b   :  { %2188 = vmatprep.subr.bf16.mxu0 %v2346_v38 }
 0x12d   :  { %2167 = vmatpush3.bf16.msra.mxu1 %v2347_v39 }
 0x12e   :  { %2189 = vmatpush3.bf16.msra.mxu0 %v2348_v40  ;;  %2168 = vmatprep.subr.bf16.mxu1 %v2349_v41  ;;  %v2019_v40 = vld [vmem:[%s3027_s5 + $0x1] ss:$0 sm:$0xff] }
 0x12f   :  { %2190 = vmatprep.subr.bf16.mxu0 %v2350_v42 }
 0x131   :  { %2169 = vmatpush3.bf16.msra.mxu1 %v2351_v43 }
 0x132   :  { %2191 = vmatpush3.bf16.msra.mxu0 %v2352_v45  ;;  %2170 = vmatprep.subr.bf16.mxu1 %v2353_v46 }
 0x133   :  { %2192 = vmatprep.subr.bf16.mxu0 %v2354_v47 }
 0x135   :  { %2171 = vmatpush3.bf16.msra.mxu1 %v2355_v48  ;;  %v2020_v48 = vld [vmem:[%s3027_s5] ss:$0 sm:$0xff] }
 0x136   :  { %2193 = vmatpush3.bf16.msra.mxu0 %v2356_v50  ;;  %2172 = vmatprep.subr.bf16.mxu1 %v2357_v51 }
 0x137   :  { %2194 = vmatprep.subr.bf16.mxu0 %v2358_v52 }
 0x139   :  { %2173 = vmatpush3.bf16.msra.mxu1 %v2359_v20 }
 0x13a   :  { %2195 = vmatpush3.bf16.msra.mxu0 %v2360_v23  ;;  %2174 = vmatprep.subr.bf16.mxu1 %v2361_v14 }
 0x13b   :  { %2196 = vmatprep.subr.bf16.mxu0 %v2362_v53 }
 0x13d   :  { %2175 = vmatpush3.bf16.msra.mxu1 %v2363_v54 }
 0x13e   :  { %2197 = vmatpush3.bf16.msra.mxu0 %v2364_v16  ;;  %2213 = vmatprep.subr.bf16.mxu1 %v2390_v15 }
 0x140   :  { %1735 = vmatmul.mubr.bf16.vlgmr.msra.gmra.mxu1 %v2726_v21 }
 0x141   :  { %1775 = vmatmul.mubr.bf16.vlgmr.msra.gmra.mxu0 %v2736_v25  ;;  %2217 = vmatprep.mubr.msk.bf16.mxu1 %vm2391_vm3, %v2390_v15 }
 0x142   :  { %2214 = vmatpush3.bf16.msra.mxu1 %v2365_v44 }
 0x143   :  { %2215 = vmatprep.subr.bf16.mxu1 %v2390_v15 }
 0x146   :  { %2216 = vmatpush3.bf16.msra.mxu1 %v2366_v49 }
 0x1a0   :  { %v2044_v55 = vpop.f32.mrf.mxu1 }
 0x1a1   :  { %v2066_v56 = vpop.f32.mrf.mxu0 }
 0x1a2   :  { %v2045_v21 = vpop.f32.mrf.mxu1 }
 0x1a3   :  { %v2067_v57 = vpop.f32.mrf.mxu0  ;;  %v2046_v25 = vadd.f32 %v2045_v21, %v2044_v55 }
 0x1a4   :  { %v2068_v27 = vadd.f32 %v2067_v57, %v2066_v56  ;;  %v2047_v58 = vpop.f32.mrf.mxu1 }
 0x1a5   :  { %v2069_v59 = vpop.f32.mrf.mxu0  ;;  %v1497_v60 = vadd.f32 %v2046_v25, %v2566_v5 }
 0x1a6   :  { %v2048_v61 = vpop.f32.mrf.mxu1 }
 0x1a7   :  { %v2070_v62 = vpop.f32.mrf.mxu0  ;;  %v1537_v63 = vadd.f32 %v2068_v27, %v1497_v60 }
 0x1c0   :  { %v2088_v0 = vpop.f32.mrf.mxu1 }
 0x1c1   :  { %v2110_v1 = vpop.f32.mrf.mxu0 }
 0x1c2   :  { %v2089_v2 = vpop.f32.mrf.mxu1 }
 0x1c3   :  { %v2111_v3 = vpop.f32.mrf.mxu0  ;;  %v2090_v5 = vadd.f32 %v2089_v2, %v2088_v0 }
 0x1c4   :  { %v2091_v8 = vpop.f32.mrf.mxu1  ;;  %v2112_v29 = vadd.f32 %v2111_v3, %v2110_v1 }
 0x1c5   :  { %v2113_v15 = vpop.f32.mrf.mxu0  ;;  %v1577_v28 = vadd.f32 %v2090_v5, %v1537_v63 }
 0x1c6   :  { %v2092_v10 = vpop.f32.mrf.mxu1 }
 0x1c7   :  { %v2114_v7 = vpop.f32.mrf.mxu0  ;;  %v1617_v31 = vadd.f32 %v2112_v29, %v1577_v28 }
 0x1e0   :  { %v2132_v11 = vpop.f32.mrf.mxu1 }
 0x1e1   :  { %v2154_v12 = vpop.f32.mrf.mxu0 }
 0x1e2   :  { %v2133_v13 = vpop.f32.mrf.mxu1 }
 0x1e3   :  { %v2155_v17 = vpop.f32.mrf.mxu0  ;;  %v2134_v30 = vadd.f32 %v2133_v13, %v2132_v11 }
 0x1e4   :  { %v2135_v18 = vpop.f32.mrf.mxu1  ;;  %v2156_v34 = vadd.f32 %v2155_v17, %v2154_v12 }
 0x1e5   :  { %v2157_v22 = vpop.f32.mrf.mxu0  ;;  %v1657_v32 = vadd.f32 %v2134_v30, %v1617_v31 }
 0x1e6   :  { %v2136_v24 = vpop.f32.mrf.mxu1 }
 0x1e7   :  { %v2158_v26 = vpop.f32.mrf.mxu0  ;;  %v1697_v4 = vadd.f32 %v2156_v34, %v1657_v32 }
 0x200   :  { %v2176_v33 = vpop.f32.mrf.mxu1 }
 0x201   :  { %v2198_v35 = vpop.f32.mrf.mxu0 }
 0x202   :  { %v2177_v36 = vpop.f32.mrf.mxu1 }
 0x203   :  { %v2178_v6 = vadd.f32 %v2177_v36, %v2176_v33  ;;  %v2199_v9 = vpop.f32.mrf.mxu0 }
 0x204   :  { %v2179_v37 = vpop.f32.mrf.mxu1  ;;  %v2200_v38 = vadd.f32 %v2199_v9, %v2198_v35 }
 0x205   :  { %v1737_v19 = vadd.f32 %v2178_v6, %v1697_v4  ;;  %v2201_v39 = vpop.f32.mrf.mxu0 }
 0x206   :  { %v2180_v41 = vpop.f32.mrf.mxu1 }
 0x207   :  { %v1777_v42 = vadd.f32 %v2200_v38, %v1737_v19  ;;  %v2202_v43 = vpop.f32.mrf.mxu0 }
 0x209   :  { %v1787_v45 = vadd.f32 %v2019_v40, %v1777_v42 }
 0x20b   :  { %v1788_v46 = vmax.f32 %v1787_v45, 0.0 }
 0x20d   :  { %v1789_v47 = vpack.c.bf16 %v1788_v46, %v1788_v46 }
 0x20f   :  { %2218 = vmatmul.mubr.msk.bf16.vlgmr.msra.gmra.mxu1 %vm1811_vm8, %v1789_v47 }
 0x2cf   :  { %v1849_v50 = vpop.f32.mrf.mxu1 }
 0x2d0   :  { %v1850_v51 = vadd.f32 %v2020_v48, %v1849_v50 }
 0x2d1   :  { %v2219_v52 = vpop.f32.mrf.mxu1 }
 0x2d2   :  { %1855 = vst [vmem:[#allocation2] sm:$0x3] %v1850_v51 }
 0x2d3   :  { %v1852_v20 = vpop.f32.mrf.mxu1 }
 0x2d4   :  { %2378 = shalt.err (!%p2375_p4)
}
 0x2d5   :  { %1865 = dma.vmem_to_hbm [thread:$0]  %s1863_s12, 32, %s3028_s6, [#allocation3]   ;;  %v2220_v23 = vpop.f32.mrf.mxu1 }
 0x2d6   :  { %2387 = dma.done.wait [#allocation3], 32  }
 0x2d7   :  { %2388 = vsyncadd [#allocation3], 4294967264 }
 0x2d8   :  { %1869 = vsyncpa [#allocation3], 1 }

</bundles_post_ra>
